<compile_context>
chip_gen: v5e
topology: v5e:2x2
jax: 0.10.0
libtpu: 0.0.40
codegen_flags: <defaults>
</compile_context>

<pallas_src>
import jax
import jax.numpy as jnp
from jax.experimental import pallas as pl
from jax.experimental.pallas import tpu as pltpu


# --------------------------------------------------------------------------
# Kernels
# --------------------------------------------------------------------------
def _ffn_resident_kernel(x_ref, w1_ref, b1_ref, w2_ref, b2_ref, o_ref):
    """Whole weight matrices live in VMEM; one grid axis over row tiles."""
    x = x_ref[...].astype(w1_ref.dtype)
    h = jnp.dot(x, w1_ref[...], preferred_element_type=jnp.float32)
    h = jnp.maximum(h + b1_ref[...], 0.0)
    # dropout: identity at inference.
    # TODO(synk): training-mode dropout (pltpu.prng_* stochastic mask) not emitted.
    acc = jnp.dot(h.astype(w2_ref.dtype), w2_ref[...],
                  preferred_element_type=jnp.float32)
    o_ref[...] = (acc + b2_ref[...]).astype(o_ref.dtype)


def _ffn_stream_kernel(x_ref, w1_ref, b1_ref, w2_ref, b2_ref, o_ref, acc_ref):
    """pf axis tiled (trailing grid axis) and reduced into an f32 accumulator."""
    j = pl.program_id(1)

    x = x_ref[...].astype(w1_ref.dtype)
    # fc_1 partial: [tm, hid] @ [hid, tpf] -> f32, + b1 (f32), ReLU
    h = jnp.dot(x, w1_ref[...], preferred_element_type=jnp.float32)
    h = jnp.maximum(h + b1_ref[...], 0.0)
    # dropout: identity at inference.
    # fc_2 partial: [tm, tpf] @ [tpf, hid], accumulated in f32.
    partial = jnp.dot(h.astype(w2_ref.dtype), w2_ref[...],
                      preferred_element_type=jnp.float32)

    @pl.when(j == 0)
    def _():
        acc_ref[...] = partial          # direct write: no zero-fill pass

    @pl.when(j != 0)
    def _():
        acc_ref[...] += partial

    @pl.when(j == pl.num_programs(1) - 1)
    def _():
        o_ref[...] = (acc_ref[...] + b2_ref[...]).astype(o_ref.dtype)


# --------------------------------------------------------------------------
# Wrapper helpers
# --------------------------------------------------------------------------
def _vmem_capacity_bytes():
    try:
        return int(pltpu.get_tpu_info().vmem_capacity_bytes)
    except Exception:
        return 64 * 1024 * 1024       # conservative (v7x per-TC VMEM)


def _largest_div_mult128(pf, target):
    """Largest multiple of 128 that divides pf and is <= target (0 if none)."""
    best = 0
    d = 128
    top = min(pf, target)
    while d <= top:
        if pf % d == 0:
            best = d
        d += 128
    return best


def _resident_vmem_est(tm, hid, pf, x_b, in_b, out_b):
    return int(
        2 * 2 * hid * pf * in_b       # W1 + W2 (double-buffer allocation slack)
        + 2 * tm * hid * x_b          # x tiles (input dtype; cast in kernel)
        + 2 * tm * hid * out_b        # output tiles
        + 2 * (pf + hid) * 4          # bias tiles (f32)
        + tm * pf * 4                 # relu intermediate (f32)
        + tm * pf * in_b              # h cast for MXU
        + tm * hid * in_b             # x cast for MXU
        + tm * hid * 4)               # f32 result before bias/cast


def _stream_vmem_est(tm, tpf, hid, x_b, in_b, out_b):
    return int(
        2 * tm * hid * x_b            # x tiles
        + 2 * tm * hid * out_b        # output tiles
        + 2 * 2 * hid * tpf * in_b    # W1 + W2 pf-slices, double-buffered
        + 2 * (tpf + hid) * 4         # bias tiles (f32)
        + tm * hid * 4                # f32 accumulator scratch
        + tm * tpf * 4                # relu intermediate (f32)
        + tm * tpf * in_b             # h cast for MXU
        + tm * hid * in_b)            # x cast for MXU


# --------------------------------------------------------------------------
# Public wrapper
# --------------------------------------------------------------------------
def positionwise_feedforward(x, w1, b1, w2, b2, *, tm=None, tpf=1024,
                             compute_dtype=jnp.bfloat16, allow_resident=True):
    """y = relu(x @ w1 + b1) @ w2 + b2  (dropout = identity, eval mode).

    x: [..., hid]; w1: [hid, pf]; b1: [pf]; w2: [pf, hid]; b2: [hid].
    compute_dtype: dtype fed to the MXU (bf16 recommended); accumulation is f32.
    """
    orig_shape = x.shape
    out_dtype = x.dtype
    hid = orig_shape[-1]
    pf = w1.shape[1]

    x2d = x.reshape(-1, hid)
    M = x2d.shape[0]

    cd = jnp.dtype(compute_dtype) if compute_dtype is not None else jnp.dtype(x.dtype)
    in_b = cd.itemsize
    x_b = jnp.dtype(x.dtype).itemsize
    out_b = jnp.dtype(out_dtype).itemsize

    vmem_cap = _vmem_capacity_bytes()
    budget = int(0.80 * vmem_cap)
    vmem_hard_cap = int(0.85 * vmem_cap)

    # ----- row tile: large (amortizes weight streaming), multiple of 128 -----
    if tm is None:
        tm = 512
    if tm >= M:
        tm = M                         # single full-extent block (rows independent)
    else:
        tm = max(128, (tm // 128) * 128)

    # Weights/biases: cast once per call (ideally the caller pre-casts to
    # compute_dtype outside the hot loop; astype is a no-op in that case).
    w1_c = w1.astype(cd)
    w2_c = w2.astype(cd)
    b1_2d = b1.reshape(1, -1).astype(jnp.float32)
    b2_2d = b2.reshape(1, hid).astype(jnp.float32)

    # ----- fast path: both weight matrices resident in VMEM -----
    resident = False
    if allow_resident:
        if _resident_vmem_est(tm, hid, pf, x_b, in_b, out_b) <= budget:
            resident = True
        else:
            t = tm
            while t > 128:
                t = max(128, t - 128)
                if _resident_vmem_est(t, hid, pf, x_b, in_b, out_b) <= budget:
                    tm = t
                    resident = True
                    break

    if resident:
        est = _resident_vmem_est(tm, hid, pf, x_b, in_b, out_b)
        vmem_limit = min(vmem_hard_cap, max(int(1.25 * est), 32 * 1024 * 1024))
        cost = pl.CostEstimate(
            flops=int(4 * M * hid * pf),
            transcendentals=0,
            bytes_accessed=int(M * hid * (x_b + out_b)
                               + 2 * hid * pf * in_b      # weights read once
                               + (pf + hid) * 4),
        )
        out = pl.pallas_call(
            _ffn_resident_kernel,
            out_shape=jax.ShapeDtypeStruct((M, hid), out_dtype),
            grid_spec=pltpu.PrefetchScalarGridSpec(
                num_scalar_prefetch=0,
                grid=(pl.cdiv(M, tm),),
                in_specs=[
                    pl.BlockSpec((tm, hid), lambda i: (i, 0)),   # x row tile
                    pl.BlockSpec((hid, pf), lambda i: (0, 0)),   # W1 (resident)
                    pl.BlockSpec((1, pf), lambda i: (0, 0)),     # b1 (resident)
                    pl.BlockSpec((pf, hid), lambda i: (0, 0)),   # W2 (resident)
                    pl.BlockSpec((1, hid), lambda i: (0, 0)),    # b2 (resident)
                ],
                out_specs=pl.BlockSpec((tm, hid), lambda i: (i, 0)),
            ),
            compiler_params=pltpu.CompilerParams(
                dimension_semantics=("parallel",),
                vmem_limit_bytes=vmem_limit,
            ),
            cost_estimate=cost,
        )(x2d, w1_c, b1_2d, w2_c, b2_2d)
        return out.reshape(orig_shape)

    # ----- streaming path: tile the pf (reduction) axis -----
    tpf_sel = _largest_div_mult128(pf, tpf)
    if tpf_sel == 0:
        if pf <= tpf:
            tpf_sel = pf               # single pf step, no padding needed
        else:
            # Rare: pf > target and not a multiple of 128 -> pad the reduction
            # dim once (padded slots contribute exactly 0: relu(x@0+0)=0).
            tpf_sel = max(128, (tpf // 128) * 128)
            pf_pad = pl.cdiv(pf, tpf_sel) * tpf_sel
            dpf = pf_pad - pf
            w1_c = jnp.pad(w1_c, ((0, 0), (0, dpf)))
            b1_2d = jnp.pad(b1_2d, ((0, 0), (0, dpf)))
            w2_c = jnp.pad(w2_c, ((0, dpf), (0, 0)))
            pf = pf_pad
    tpf = tpf_sel

    # Shrink to the VMEM budget: reduce tpf first (reduction dim), then tm.
    while (_stream_vmem_est(tm, tpf, hid, x_b, in_b, out_b) > budget
           and tpf > 128 and pf % tpf == 0):
        new_tpf = _largest_div_mult128(pf, tpf - 128)
        if new_tpf == 0:
            break
        tpf = new_tpf
    while _stream_vmem_est(tm, tpf, hid, x_b, in_b, out_b) > budget and tm > 128:
        tm = max(128, tm - 128)

    n_mtiles = pl.cdiv(M, tm)
    grid = (n_mtiles, pf // tpf)

    est = _stream_vmem_est(tm, tpf, hid, x_b, in_b, out_b)
    vmem_limit = min(vmem_hard_cap, max(int(1.25 * est), 32 * 1024 * 1024))
    cost = pl.CostEstimate(
        flops=int(4 * M * hid * pf),
        transcendentals=0,
        bytes_accessed=int(M * hid * (x_b + out_b)
                           + n_mtiles * 2 * hid * pf * in_b   # weight re-streaming
                           + (pf + hid) * 4),
    )

    out = pl.pallas_call(
        _ffn_stream_kernel,
        out_shape=jax.ShapeDtypeStruct((M, hid), out_dtype),
        grid_spec=pltpu.PrefetchScalarGridSpec(
            num_scalar_prefetch=0,
            grid=grid,
            in_specs=[
                pl.BlockSpec((tm, hid), lambda i, j: (i, 0)),    # x row tile
                pl.BlockSpec((hid, tpf), lambda i, j: (0, j)),   # W1 pf-slice
                pl.BlockSpec((1, tpf), lambda i, j: (0, j)),     # b1 pf-slice
                pl.BlockSpec((tpf, hid), lambda i, j: (j, 0)),   # W2 pf-slice
                pl.BlockSpec((1, hid), lambda i, j: (0, 0)),     # b2 (constant)
            ],
            out_specs=pl.BlockSpec((tm, hid), lambda i, j: (i, 0)),
            scratch_shapes=[pltpu.VMEM((tm, hid), jnp.float32)],
        ),
        compiler_params=pltpu.CompilerParams(
            dimension_semantics=("parallel", "arbitrary"),
            vmem_limit_bytes=vmem_limit,
        ),
        cost_estimate=cost,
    )(x2d, w1_c, b1_2d, w2_c, b2_2d)

    return out.reshape(orig_shape)


# --------------------------------------------------------------------------
# Demo / correctness smoke test
# --------------------------------------------------------------------------
if __name__ == "__main__":
    key = jax.random.PRNGKey(0)

    # --- small config (resident fast path) ---
    batch, seq, hid_dim, pf_dim = 2, 8, 32, 64
    kx, kw1, kb1, kw2, kb2, k2 = jax.random.split(key, 6)

    # nn.Linear weights stored pre-transposed as [in, out] for x @ W.
    x = jax.random.normal(kx, (batch, seq, hid_dim), dtype=jnp.float32)
    w1 = jax.random.normal(kw1, (hid_dim, pf_dim), dtype=jnp.float32) * 0.05
    b1 = jax.random.normal(kb1, (pf_dim,), dtype=jnp.float32) * 0.05
    w2 = jax.random.normal(kw2, (pf_dim, hid_dim), dtype=jnp.float32) * 0.05
    b2 = jax.random.normal(kb2, (hid_dim,), dtype=jnp.float32) * 0.05

    y_ref = jnp.maximum(x @ w1 + b1, 0.0) @ w2 + b2

    y32 = positionwise_feedforward(x, w1, b1, w2, b2, compute_dtype=jnp.float32)
    jax.block_until_ready(y32)
    assert y32.shape == (batch, seq, hid_dim)
    assert jnp.allclose(y32, y_ref, atol=1e-4, rtol=1e-4)

    y16 = positionwise_feedforward(x, w1, b1, w2, b2)  # bf16 MXU, f32 accumulation
    jax.block_until_ready(y16)
    assert y16.shape == (batch, seq, hid_dim)
    assert jnp.allclose(y16, y_ref, atol=5e-2, rtol=5e-2)

    # --- exercise the streaming (pf-tiled, accumulator) path ---
    hid2, pf2, M2 = 128, 256, 256
    ka, kb, kc, kd, ke = jax.random.split(k2, 5)
    x2 = jax.random.normal(ka, (M2, hid2), dtype=jnp.float32)
    w1b = jax.random.normal(kb, (hid2, pf2), dtype=jnp.float32) * 0.05
    b1b = jax.random.normal(kc, (pf2,), dtype=jnp.float32) * 0.05
    w2b = jax.random.normal(kd, (pf2, hid2), dtype=jnp.float32) * 0.05
    b2b = jax.random.normal(ke, (hid2,), dtype=jnp.float32) * 0.05
    y_ref2 = jnp.maximum(x2 @ w1b + b1b, 0.0) @ w2b + b2b

    y_stream = positionwise_feedforward(
        x2, w1b, b1b, w2b, b2b, tm=128, tpf=128,
        compute_dtype=jnp.float32, allow_resident=False)
    jax.block_until_ready(y_stream)
    assert y_stream.shape == (M2, hid2)
    assert jnp.allclose(y_stream, y_ref2, atol=1e-4, rtol=1e-4)

    print("KERNEL_OK")
</pallas_src>

<mosaic_0001>
module attributes {stable_mosaic.version = 11 : i64} {
  func.func @_ffn_resident_kernel(%arg0: i32, %arg1: memref<16x32xf32, #tpu.memory_space<vmem>>, %arg2: memref<32x64xf32, #tpu.memory_space<vmem>>, %arg3: memref<1x64xf32, #tpu.memory_space<vmem>>, %arg4: memref<64x32xf32, #tpu.memory_space<vmem>>, %arg5: memref<1x32xf32, #tpu.memory_space<vmem>>, %arg6: memref<16x32xf32, #tpu.memory_space<vmem>>) attributes {dimension_semantics = [#tpu.dimension_semantics<parallel>], iteration_bounds = array<i64: 1>, scalar_prefetch = 0 : i64, scratch_operands = 0 : i64, tpu.core_type = #tpu.core_type<tc>, window_params = [{transform_indices = @transform_0, window_bounds = array<i64: 16, 32>}, {pipeline_mode = #tpu.pipeline_mode<synchronous>, transform_indices = @transform_1, window_bounds = array<i64: 32, 64>}, {pipeline_mode = #tpu.pipeline_mode<synchronous>, transform_indices = @transform_2, window_bounds = array<i64: 1, 64>}, {pipeline_mode = #tpu.pipeline_mode<synchronous>, transform_indices = @transform_3, window_bounds = array<i64: 64, 32>}, {pipeline_mode = #tpu.pipeline_mode<synchronous>, transform_indices = @transform_4, window_bounds = array<i64: 1, 32>}, {transform_indices = @transform_5, window_bounds = array<i64: 16, 32>}]} {
    %c0 = arith.constant 0 : index
    %c0_0 = arith.constant 0 : index
    %0 = vector.load %arg1[%c0, %c0_0] : memref<16x32xf32, #tpu.memory_space<vmem>>, vector<16x32xf32>
    %c0_1 = arith.constant 0 : index
    %c0_2 = arith.constant 0 : index
    %1 = vector.load %arg2[%c0_1, %c0_2] : memref<32x64xf32, #tpu.memory_space<vmem>>, vector<32x64xf32>
    %cst = arith.constant dense<0.000000e+00> : vector<16x64xf32>
    %2 = tpu.matmul %0, %1, %cst {dimension_numbers = #tpu.dot_dimension_numbers<[1], [0], [0], [1], [0, 0, 1, 1], [], []>} : vector<16x32xf32>, vector<32x64xf32>, vector<16x64xf32> -> vector<16x64xf32>
    %c0_3 = arith.constant 0 : index
    %c0_4 = arith.constant 0 : index
    %3 = vector.load %arg3[%c0_3, %c0_4] : memref<1x64xf32, #tpu.memory_space<vmem>>, vector<1x64xf32>
    %4 = vector.broadcast %3 : vector<1x64xf32> to vector<16x64xf32>
    %5 = arith.addf %2, %4 : vector<16x64xf32>
    %cst_5 = arith.constant 0.000000e+00 : f32
    %6 = vector.broadcast %cst_5 : f32 to vector<16x64xf32>
    %7 = arith.maximumf %5, %6 : vector<16x64xf32>
    %c0_6 = arith.constant 0 : index
    %c0_7 = arith.constant 0 : index
    %8 = vector.load %arg4[%c0_6, %c0_7] : memref<64x32xf32, #tpu.memory_space<vmem>>, vector<64x32xf32>
    %cst_8 = arith.constant dense<0.000000e+00> : vector<16x32xf32>
    %9 = tpu.matmul %7, %8, %cst_8 {dimension_numbers = #tpu.dot_dimension_numbers<[1], [0], [0], [1], [0, 0, 1, 1], [], []>} : vector<16x64xf32>, vector<64x32xf32>, vector<16x32xf32> -> vector<16x32xf32>
    %c0_9 = arith.constant 0 : index
    %c0_10 = arith.constant 0 : index
    %10 = vector.load %arg5[%c0_9, %c0_10] : memref<1x32xf32, #tpu.memory_space<vmem>>, vector<1x32xf32>
    %11 = vector.broadcast %10 : vector<1x32xf32> to vector<16x32xf32>
    %12 = arith.addf %9, %11 : vector<16x32xf32>
    %c0_11 = arith.constant 0 : index
    %c0_12 = arith.constant 0 : index
    %13 = vector.load %arg6[%c0_11, %c0_12] : memref<16x32xf32, #tpu.memory_space<vmem>>, vector<16x32xf32>
    tpu.vector_store %arg6[%c0_11, %c0_12], %12 {strides = array<i32>} : memref<16x32xf32, #tpu.memory_space<vmem>>, vector<16x32xf32>,
    return
  }
  func.func @transform_0(%arg0: i32) -> (i32, i32) {
    %c0_i32 = arith.constant 0 : i32
    %c0_i32_0 = arith.constant 0 : i32
    return %arg0, %c0_i32 : i32, i32
  }
  func.func @transform_1(%arg0: i32) -> (i32, i32) {
    %c0_i32 = arith.constant 0 : i32
    %c0_i32_0 = arith.constant 0 : i32
    %c0_i32_1 = arith.constant 0 : i32
    return %c0_i32, %c0_i32_0 : i32, i32
  }
  func.func @transform_2(%arg0: i32) -> (i32, i32) {
    %c0_i32 = arith.constant 0 : i32
    %c0_i32_0 = arith.constant 0 : i32
    %c0_i32_1 = arith.constant 0 : i32
    return %c0_i32, %c0_i32_0 : i32, i32
  }
  func.func @transform_3(%arg0: i32) -> (i32, i32) {
    %c0_i32 = arith.constant 0 : i32
    %c0_i32_0 = arith.constant 0 : i32
    %c0_i32_1 = arith.constant 0 : i32
    return %c0_i32, %c0_i32_0 : i32, i32
  }
  func.func @transform_4(%arg0: i32) -> (i32, i32) {
    %c0_i32 = arith.constant 0 : i32
    %c0_i32_0 = arith.constant 0 : i32
    %c0_i32_1 = arith.constant 0 : i32
    return %c0_i32, %c0_i32_0 : i32, i32
  }
  func.func @transform_5(%arg0: i32) -> (i32, i32) {
    %c0_i32 = arith.constant 0 : i32
    %c0_i32_0 = arith.constant 0 : i32
    return %arg0, %c0_i32 : i32, i32
  }
}

</mosaic_0001>

<bundles_post_ra>
// kernel: tpu_custom_call.1
= control target key start
LH: loop header
LB: loop body
LE: loop exit
PB: predicated region body
PF: predicated region fallthrough
CT: control target
= control target key end

     0   :  { %s260_s0 = inlined_call_operand.vmem [shape: f32[16,32], index: 0, kind: input, shape index: {}]   ;;  %s261_s1 = inlined_call_operand.vmem [shape: f32[32,64], index: 1, kind: input, shape index: {}]   ;;  %s262_s2 = inlined_call_operand.vmem [shape: f32[1,64], index: 2, kind: input, shape index: {}]   ;;  %s263_s3 = inlined_call_operand.vmem [shape: f32[64,32], index: 3, kind: input, shape index: {}]   ;;  %s264_s4 = inlined_call_operand.vmem [shape: f32[1,32], index: 4, kind: input, shape index: {}]   ;;  %s265_s5 = inlined_call_operand.hbm [shape: f32[16,32], index: 5, kind: output, shape index: {}]  }
   0x1   :  { %v26_v0 = vld [vmem:[%s261_s1 + $0x18] sm:$0xff]  ;;  %v25_v1 = vld [vmem:[%s261_s1 + $0x10] sm:$0xff]  ;;  %v24_v2 = vld [vmem:[%s261_s1 + $0x8] sm:$0xff] }
   0x2   :  { %129 = vmatpush.msra.mxu3 %v26_v0  ;;  %50 = vmatpush.msra.mxu0 %v26_v0  ;;  %v70_v3 = vld [vmem:[%s263_s3 + $0x38] sm:$0xff]  ;;  %v69_v4 = vld [vmem:[%s263_s3 + $0x30] sm:$0xff]  ;;  %v23_v5 = vld [vmem:[%s261_s1] sm:$0xff] }
   0x3   :  { %133 = vmatpush.msra.mxu2 %v70_v3  ;;  %90 = vmatpush.msra.mxu1 %v70_v3 }
   0x4   :  { %130 = vmatpush.msra.mxu3 %v25_v1  ;;  %51 = vmatpush.msra.mxu0 %v25_v1 }
   0x5   :  { %10 = vsyncpa [#allocation3], 0  ;;  %v22_v6 = vld [vmem:[%s260_s0 + $0x8] sm:$0xff]  ;;  %vm31_vm0 = vcmask 261120   ;;  %v21_v7 = vld [vmem:[%s260_s0] sm:$0xff]  ;;  %134 = vmatpush.msra.mxu2 %v69_v4  ;;  %91 = vmatpush.msra.mxu1 %v69_v4  ;;  %vm75_vm1 = vcmask 523264  }
   0x6   :  { %131 = vmatpush.msra.mxu3 %v24_v2  ;;  %52 = vmatpush.msra.mxu0 %v24_v2  ;;  %v68_v8 = vld [vmem:[%s263_s3 + $0x28] sm:$0xff]  ;;  %v67_v9 = vld [vmem:[%s263_s3 + $0x20] sm:$0xff]  ;;  %v66_v10 = vld [vmem:[%s263_s3 + $0x18] sm:$0xff]  ;;  %s113_s25 = sshll.u32 %s265_s5, 4  ;;  %s173_s26 = smov 128   ;;  %s114_s25 = int_to_ptr.hbm [resolvable:$true] %s113_s25 }
   0x7   :  { %135 = vmatpush.msra.mxu2 %v68_v8  ;;  %92 = vmatpush.msra.mxu1 %v68_v8  ;;  %v65_v11 = vld [vmem:[%s263_s3 + $0x10] sm:$0xff]  ;;  %v64_v12 = vld [vmem:[%s263_s3 + $0x8] sm:$0xff]  ;;  %v63_v13 = vld [vmem:[%s263_s3] sm:$0xff]  ;;  %s172_s3 = smov [#allocation2]   ;;  %s174_s27 = smov 8  }
   0x8   :  { %132 = vmatpush.msra.mxu3 %v23_v5  ;;  %53 = vmatpush.msra.mxu0 %v23_v5  ;;  %v144_v14 = vld [vmem:[%s262_s2] ss:$0 sm:$0xff]  ;;  %s111_s23 = sshll.u32 %s172_s3, 4  ;;  %s112_s23 = int_to_ptr.vmem [resolvable:$true] %s111_s23 }
   0x9   :  { %126 = vmatmul.msk.f32.vlgmr.msra.gmra.mxu3 %vm31_vm0, %v22_v6  ;;  %125 = vmatmul.msk.f32.vlgmr.msra.gmra.mxu0 %vm31_vm0, %v21_v7  ;;  %v145_v21 = vld [vmem:[%s264_s4] ss:$0 sm:$0xff] }
   0xa   :  { %136 = vmatpush.msra.mxu2 %v67_v9  ;;  %93 = vmatpush.msra.mxu1 %v67_v9 }
   0xc   :  { %137 = vmatpush.msra.mxu2 %v66_v10  ;;  %94 = vmatpush.msra.mxu1 %v66_v10 }
   0xe   :  { %138 = vmatpush.msra.mxu2 %v65_v11  ;;  %95 = vmatpush.msra.mxu1 %v65_v11 }
  0x10   :  { %139 = vmatpush.msra.mxu2 %v64_v12  ;;  %96 = vmatpush.msra.mxu1 %v64_v12 }
  0x12   :  { %140 = vmatpush.msra.mxu2 %v63_v13  ;;  %97 = vmatpush.msra.mxu1 %v63_v13 }
  0x86   :  { %v55_v15 = vpop.f32.mrf.mxu0 }
  0x87   :  { %v56_v16 = vadd.f32 %v144_v14, %v55_v15 }
  0x89   :  { %v61_v17 = vmax.f32 %v56_v16, 0.0 }
  0x8b   :  { %127 = vmatmul.msk.f32.vlgmr.msra.gmra.mxu1 %vm75_vm1, %v61_v17 }
  0x8c   :  { %v58_v18 = vpop.f32.mrf.mxu3 }
  0x8d   :  { %v59_v19 = vadd.f32 %v144_v14, %v58_v18 }
  0x8f   :  { %v62_v20 = vmax.f32 %v59_v19, 0.0 }
  0x91   :  { %128 = vmatmul.msk.f32.vlgmr.msra.gmra.mxu2 %vm75_vm1, %v62_v20 }
 0x108   :  { %v99_v22 = vpop.f32.mrf.mxu1 }
 0x109   :  { %v100_v23 = vadd.f32 %v145_v21, %v99_v22 }
 0x10b   :  { %105 = vst.msk [vmem:[#allocation2] sm:$0xff] %vm31_vm0, %v100_v23 }
 0x114   :  { %v102_v24 = vpop.f32.mrf.mxu2 }
 0x115   :  { %v103_v25 = vadd.f32 %v145_v21, %v102_v24 }
 0x117   :  { %106 = vst.msk [vmem:[#allocation2 + $0x8] sm:$0xff] %vm31_vm0, %v103_v25 }
 0x118   :  { %119 = dma.vmem_to_hbm [thread:$0]  %s112_s23, 256, %s114_s25, [#allocation3], %s173_s26, %s173_s26, %s174_s27  }
 0x119   :  { %170 = dma.done.wait [#allocation3], 256  }
 0x11a   :  { %171 = vsyncadd [#allocation3], 4294967040 }
 0x11b   :  { %124 = vsyncpa [#allocation3], 1 }

</bundles_post_ra>
